<compile_context>
chip_gen: v7x
topology: tpu7x:2x2x1
jax: 0.10.0
libtpu: 0.0.40
codegen_flags: <defaults>
</compile_context>

<pallas_src>
import functools

import jax
import jax.numpy as jnp
from jax import lax
from jax.experimental import pallas as pl
from jax.experimental.pallas import tpu as pltpu  # noqa: F401  (TPU backend assumed)


LANE = 128  # TPU lane width


# ----------------------------- Pallas kernel -------------------------------

def _fused_kernel(threshold, B, F, S,
                  frames_ref, w1_ref, b1_ref, w2_ref, b2_ref, gnorm_ref,
                  emb_ref, scores_ref, dec_ref):
    """frames (B*F, D) -> emb (B, E), padded cosine scores (B, SP), decisions (B, LANE)."""
    x = frames_ref[...]                                           # (B*F, D) f32

    # MLP layer 1 on all frames of all batch elements at once (single MXU matmul).
    h = jnp.dot(x.astype(w1_ref.dtype), w1_ref[...],
                preferred_element_type=jnp.float32)               # (B*F, H) f32 acc
    h = jnp.maximum(h + b1_ref[...], 0.0)                         # relu, f32

    # Mean-pool over frames BEFORE the second matmul (exact: the linear layer
    # commutes with the mean) -> second matmul is F times smaller.
    hp = jnp.mean(h.reshape(B, F, h.shape[-1]), axis=1)           # (B, H) f32

    # MLP layer 2 on the pooled representation.
    emb = jnp.dot(hp.astype(w2_ref.dtype), w2_ref[...],
                  preferred_element_type=jnp.float32) + b2_ref[...]  # (B, E) f32
    emb_ref[...] = emb

    # Cosine similarity against PRE-NORMALIZED (and zero-padded) enroll
    # embeddings; contract on the last axes (no explicit transpose via XLU).
    e_n = emb * lax.rsqrt(jnp.sum(emb * emb, axis=-1, keepdims=True) + 1e-12)
    scores = lax.dot_general(
        e_n, gnorm_ref[...],
        dimension_numbers=(((1,), (1,)), ((), ())),
        preferred_element_type=jnp.float32)                       # (B, SP) f32
    scores_ref[...] = scores                                      # lane-dense store

    # Fused decision: argmax (first maximal index) + threshold, over the REAL
    # S columns only (padded columns masked to -inf so they can never win).
    SP = scores.shape[-1]
    col = lax.broadcasted_iota(jnp.int32, scores.shape, 1)
    s_m = jnp.where(col < S, scores, jnp.full_like(scores, -jnp.inf))
    max_s = jnp.max(s_m, axis=-1, keepdims=True)                  # (B, 1)
    arg = jnp.min(jnp.where(s_m == max_s, col, SP), axis=-1, keepdims=True)
    dec = jnp.where(max_s > threshold, arg,
                    jnp.full_like(arg, -1)).astype(jnp.int32)     # (B, 1)
    dec_ref[...] = jnp.broadcast_to(dec, dec_ref.shape)           # lane-dense store


# ------------------------------ wrapper ------------------------------------

def fused_forward(frames_flat, w1, b1, w2, b2, gnorm_pad, *, B, F, S, threshold):
    """One pallas_call: frames -> (emb [B,E], padded scores [B,SP], dec [B,LANE])."""
    BF, D = frames_flat.shape
    H = w1.shape[1]
    E = w2.shape[1]
    SP = gnorm_pad.shape[0]
    assert BF == B * F
    assert SP % LANE == 0

    kernel = functools.partial(_fused_kernel, float(threshold), B, F, S)

    # Single grid step: all tensors are tiny and live fully in VMEM.
    # All outputs are lane-dense (E, SP, LANE are multiples of 128) -> unmasked vst.
    return pl.pallas_call(
        kernel,
        out_shape=(
            jax.ShapeDtypeStruct((B, E), jnp.float32),
            jax.ShapeDtypeStruct((B, SP), jnp.float32),
            jax.ShapeDtypeStruct((B, LANE), jnp.int32),
        ),
        in_specs=[
            pl.BlockSpec((BF, D), lambda: (0, 0)),
            pl.BlockSpec((D, H), lambda: (0, 0)),
            pl.BlockSpec((1, H), lambda: (0, 0)),
            pl.BlockSpec((H, E), lambda: (0, 0)),
            pl.BlockSpec((1, E), lambda: (0, 0)),
            pl.BlockSpec((SP, E), lambda: (0, 0)),
        ],
        out_specs=(
            pl.BlockSpec((B, E), lambda: (0, 0)),
            pl.BlockSpec((B, SP), lambda: (0, 0)),
            pl.BlockSpec((B, LANE), lambda: (0, 0)),
        ),
    )(frames_flat, w1, b1, w2, b2, gnorm_pad)


def _normalize_and_pad_rows(g):
    """Unit-normalize rows and zero-pad the row count to a multiple of 128.

    Done ONCE per enroll matrix, outside the kernel (not per forward call).
    Zero rows yield score 0, and are masked out of the argmax inside the kernel.
    """
    g = g.astype(jnp.float32)
    g = g * lax.rsqrt(jnp.sum(g * g, axis=-1, keepdims=True) + 1e-12)
    S, E = g.shape
    SP = max(LANE, pl.cdiv(S, LANE) * LANE)
    if SP != S:
        g = jnp.concatenate([g, jnp.zeros((SP - S, E), jnp.float32)], axis=0)
    return g


class DefendedModelPallas:
    """JAX/Pallas port of defended_model with defense=None (sequential order).

    forward(x, return_emb, enroll_embs) == base_model(x, flag=0, ...) since
    process_sequential is the identity when no defense is configured.
    """

    def __init__(self, params, threshold, frame_len):
        self.threshold = float(threshold)
        self.frame_len = frame_len
        # Weights stored bf16 for MXU operands (f32 accumulation in-kernel);
        # biases stay f32 (elementwise path is f32 on all generations, v5e-safe).
        self.w1 = params["w1"].astype(jnp.bfloat16)
        self.b1 = params["b1"].astype(jnp.float32)
        self.w2 = params["w2"].astype(jnp.bfloat16)
        self.b2 = params["b2"].astype(jnp.float32)
        # Enroll embeddings pre-normalized + lane-padded ONCE here.
        self.num_spks = params["enroll_embs"].shape[0]
        self.enroll_norm_pad = _normalize_and_pad_rows(params["enroll_embs"])
        # TODO(synk): defense hooks / flag2defense pipeline are identity with
        # defense=None, so they are not represented here.

    # ---- glue (no compute) ----
    def _frames(self, x):
        # x: [B, 1, T] -> flattened frames [B*F, D]
        B, C, T = x.shape
        assert C == 1
        D = self.frame_len
        F = T // D
        return x.reshape(B * F, D), B, F

    def _enroll(self, enroll_embs):
        if enroll_embs is None:
            return self.enroll_norm_pad, self.num_spks
        return _normalize_and_pad_rows(enroll_embs), enroll_embs.shape[0]

    def _run(self, x, enroll_embs=None):
        frames, B, F = self._frames(x)
        gnorm_pad, S = self._enroll(enroll_embs)
        emb, scores_pad, dec_pad = fused_forward(
            frames, self.w1, self.b1, self.w2, self.b2, gnorm_pad,
            B=B, F=F, S=S, threshold=self.threshold)
        # Free XLA slices back to the logical shapes.
        return emb, scores_pad[:, :S], dec_pad[:, 0]

    # ---- public API mirroring the torch module ----
    def embedding(self, x):
        emb, _, _ = self._run(x)
        return emb

    def score(self, x, enroll_embs=None):
        _, scores, _ = self._run(x, enroll_embs)
        return scores

    def forward(self, x, return_emb=False, enroll_embs=None):
        emb, logits, _ = self._run(x, enroll_embs)
        return (logits, emb) if return_emb else logits

    __call__ = forward

    def make_decision(self, x, enroll_embs=None):
        _, scores, dec = self._run(x, enroll_embs)
        # int32 on purpose: jnp int64 silently downcasts unless jax_enable_x64.
        return dec, scores


# ------------------------------ main ----------------------------------------

if __name__ == "__main__":
    # Small shapes consistent with forward: wav [B, 1, T]
    B = 2            # batch
    D = 128          # frame length (lane axis)
    F = 8            # number of frames
    T = F * D        # waveform length
    H = 128          # hidden dim
    E = 128          # embedding dim
    S = 8            # number of enrolled speakers
    THRESHOLD = 0.0

    key = jax.random.PRNGKey(0)
    kx, kw1, kb1, kw2, kb2, ke = jax.random.split(key, 6)

    x = jax.random.normal(kx, (B, 1, T), dtype=jnp.float32)

    params = {
        "w1": jax.random.normal(kw1, (D, H), dtype=jnp.float32) * 0.05,
        "b1": jax.random.normal(kb1, (1, H), dtype=jnp.float32) * 0.01,
        "w2": jax.random.normal(kw2, (H, E), dtype=jnp.float32) * 0.05,
        "b2": jax.random.normal(kb2, (1, E), dtype=jnp.float32) * 0.01,
        "enroll_embs": jax.random.normal(ke, (S, E), dtype=jnp.float32),
    }

    model = DefendedModelPallas(params, threshold=THRESHOLD, frame_len=D)

    # forward (defense=None path: base_model(x, flag=0, ...))
    logits, emb = model.forward(x, return_emb=True)
    decisions, scores = model.make_decision(x)

    jax.block_until_ready((logits, emb, decisions, scores))

    assert logits.shape == (B, S)
    assert emb.shape == (B, E)
    assert scores.shape == (B, S)
    assert decisions.shape == (B,)
    assert decisions.dtype == jnp.int32
    # Decision sanity: matches a pure-JAX argmax/threshold on the returned scores.
    ref_dec = jnp.where(jnp.max(scores, axis=1) > THRESHOLD,
                        jnp.argmax(scores, axis=1).astype(jnp.int32),
                        jnp.full((B,), -1, jnp.int32))
    assert bool(jnp.all(decisions == ref_dec))

    print("KERNEL_OK")
</pallas_src>

<mosaic_0001>
module attributes {stable_mosaic.version = 11 : i64} {
  func.func @_fused_kernel(%arg0: memref<16x128xf32, #tpu.memory_space<vmem>>, %arg1: memref<128x128xbf16, #tpu.memory_space<vmem>>, %arg2: memref<1x128xf32, #tpu.memory_space<vmem>>, %arg3: memref<128x128xbf16, #tpu.memory_space<vmem>>, %arg4: memref<1x128xf32, #tpu.memory_space<vmem>>, %arg5: memref<128x128xf32, #tpu.memory_space<vmem>>, %arg6: memref<2x128xf32, #tpu.memory_space<vmem>>, %arg7: memref<2x128xf32, #tpu.memory_space<vmem>>, %arg8: memref<2x128xi32, #tpu.memory_space<vmem>>) attributes {dimension_semantics = [], scalar_prefetch = 0 : i64, scratch_operands = 0 : i64, tpu.core_type = #tpu.core_type<tc>} {
    %c0 = arith.constant 0 : index
    %c0_0 = arith.constant 0 : index
    %0 = vector.load %arg0[%c0, %c0_0] : memref<16x128xf32, #tpu.memory_space<vmem>>, vector<16x128xf32>
    %1 = arith.truncf %0 : vector<16x128xf32> to vector<16x128xbf16>
    %c0_1 = arith.constant 0 : index
    %c0_2 = arith.constant 0 : index
    %2 = vector.load %arg1[%c0_1, %c0_2] : memref<128x128xbf16, #tpu.memory_space<vmem>>, vector<128x128xbf16>
    %cst = arith.constant dense<0.000000e+00> : vector<16x128xf32>
    %3 = tpu.matmul %1, %2, %cst {dimension_numbers = #tpu.dot_dimension_numbers<[1], [0], [0], [1], [0, 0, 1, 1], [], []>} : vector<16x128xbf16>, vector<128x128xbf16>, vector<16x128xf32> -> vector<16x128xf32>
    %c0_3 = arith.constant 0 : index
    %c0_4 = arith.constant 0 : index
    %4 = vector.load %arg2[%c0_3, %c0_4] : memref<1x128xf32, #tpu.memory_space<vmem>>, vector<1x128xf32>
    %5 = vector.broadcast %4 : vector<1x128xf32> to vector<16x128xf32>
    %6 = arith.addf %3, %5 : vector<16x128xf32>
    %cst_5 = arith.constant 0.000000e+00 : f32
    %7 = vector.broadcast %cst_5 : f32 to vector<16x128xf32>
    %8 = arith.maximumf %6, %7 : vector<16x128xf32>
    %9 = vector.shape_cast %8 : vector<16x128xf32> to vector<2x8x128xf32>
    %cst_6 = arith.constant dense<0.000000e+00> : vector<2x128xf32>
    %10 = vector.multi_reduction <add>, %9, %cst_6 [1] : vector<2x8x128xf32> to vector<2x128xf32>
    %cst_7 = arith.constant 8.000000e+00 : f32
    %11 = vector.broadcast %cst_7 : f32 to vector<2x128xf32>
    %12 = arith.divf %10, %11 : vector<2x128xf32>
    %13 = arith.truncf %12 : vector<2x128xf32> to vector<2x128xbf16>
    %c0_8 = arith.constant 0 : index
    %c0_9 = arith.constant 0 : index
    %14 = vector.load %arg3[%c0_8, %c0_9] : memref<128x128xbf16, #tpu.memory_space<vmem>>, vector<128x128xbf16>
    %cst_10 = arith.constant dense<0.000000e+00> : vector<2x128xf32>
    %15 = tpu.matmul %13, %14, %cst_10 {dimension_numbers = #tpu.dot_dimension_numbers<[1], [0], [0], [1], [0, 0, 1, 1], [], []>} : vector<2x128xbf16>, vector<128x128xbf16>, vector<2x128xf32> -> vector<2x128xf32>
    %c0_11 = arith.constant 0 : index
    %c0_12 = arith.constant 0 : index
    %16 = vector.load %arg4[%c0_11, %c0_12] : memref<1x128xf32, #tpu.memory_space<vmem>>, vector<1x128xf32>
    %17 = vector.broadcast %16 : vector<1x128xf32> to vector<2x128xf32>
    %18 = arith.addf %15, %17 : vector<2x128xf32>
    %c0_13 = arith.constant 0 : index
    %c0_14 = arith.constant 0 : index
    %19 = vector.load %arg6[%c0_13, %c0_14] : memref<2x128xf32, #tpu.memory_space<vmem>>, vector<2x128xf32>
    tpu.vector_store %arg6[%c0_13, %c0_14], %18 {strides = array<i32>} : memref<2x128xf32, #tpu.memory_space<vmem>>, vector<2x128xf32>,
    %20 = arith.mulf %18, %18 : vector<2x128xf32>
    %cst_15 = arith.constant dense<0.000000e+00> : vector<2xf32>
    %21 = vector.multi_reduction <add>, %20, %cst_15 [1] : vector<2x128xf32> to vector<2xf32>
    %22 = vector.shape_cast %21 : vector<2xf32> to vector<2x1xf32>
    %cst_16 = arith.constant 9.99999996E-13 : f32
    %23 = vector.broadcast %cst_16 : f32 to vector<2x1xf32>
    %24 = arith.addf %22, %23 : vector<2x1xf32>
    %25 = math.rsqrt %24 : vector<2x1xf32>
    %26 = vector.broadcast %25 : vector<2x1xf32> to vector<2x128xf32>
    %27 = arith.mulf %18, %26 : vector<2x128xf32>
    %c0_17 = arith.constant 0 : index
    %c0_18 = arith.constant 0 : index
    %28 = vector.load %arg5[%c0_17, %c0_18] : memref<128x128xf32, #tpu.memory_space<vmem>>, vector<128x128xf32>
    %cst_19 = arith.constant dense<0.000000e+00> : vector<2x128xf32>
    %29 = tpu.matmul %27, %28, %cst_19 {dimension_numbers = #tpu.dot_dimension_numbers<[1], [1], [0], [0], [0, 0, 1, 0], [], []>} : vector<2x128xf32>, vector<128x128xf32>, vector<2x128xf32> -> vector<2x128xf32>
    %c0_20 = arith.constant 0 : index
    %c0_21 = arith.constant 0 : index
    %30 = vector.load %arg7[%c0_20, %c0_21] : memref<2x128xf32, #tpu.memory_space<vmem>>, vector<2x128xf32>
    tpu.vector_store %arg7[%c0_20, %c0_21], %29 {strides = array<i32>} : memref<2x128xf32, #tpu.memory_space<vmem>>, vector<2x128xf32>,
    %31 = tpu.iota {dimensions = array<i32: 1>} : vector<2x128xi32>
    %c8_i32 = arith.constant 8 : i32
    %32 = vector.broadcast %c8_i32 : i32 to vector<2x128xi32>
    %33 = arith.cmpi slt, %31, %32 : vector<2x128xi32>
    %cst_22 = arith.constant 0xFF800000 : f32
    %34 = vector.broadcast %cst_22 : f32 to vector<2x128xf32>
    %35 = arith.select %33, %29, %34 : vector<2x128xi1>, vector<2x128xf32>
    %cst_23 = arith.constant dense<0xFF800000> : vector<2xf32>
    %36 = vector.multi_reduction <maximumf>, %35, %cst_23 [1] : vector<2x128xf32> to vector<2xf32>
    %37 = vector.shape_cast %36 : vector<2xf32> to vector<2x1xf32>
    %38 = vector.broadcast %37 : vector<2x1xf32> to vector<2x128xf32>
    %39 = arith.cmpf oeq, %35, %38 : vector<2x128xf32>
    %c128_i32 = arith.constant 128 : i32
    %40 = vector.broadcast %c128_i32 : i32 to vector<2x128xi32>
    %41 = arith.select %39, %31, %40 : vector<2x128xi1>, vector<2x128xi32>
    %cst_24 = arith.constant dense<2147483647> : vector<2xi32>
    %42 = vector.multi_reduction <minsi>, %41, %cst_24 [1] : vector<2x128xi32> to vector<2xi32>
    %43 = vector.shape_cast %42 : vector<2xi32> to vector<2x1xi32>
    %cst_25 = arith.constant 0.000000e+00 : f32
    %44 = vector.broadcast %cst_25 : f32 to vector<2x1xf32>
    %45 = arith.cmpf ogt, %37, %44 : vector<2x1xf32>
    %c-1_i32 = arith.constant -1 : i32
    %46 = vector.broadcast %c-1_i32 : i32 to vector<2x1xi32>
    %47 = arith.select %45, %43, %46 : vector<2x1xi1>, vector<2x1xi32>
    %48 = vector.shape_cast %47 : vector<2x1xi32> to vector<2x1xi32>
    %49 = vector.broadcast %48 : vector<2x1xi32> to vector<2x128xi32>
    %c0_26 = arith.constant 0 : index
    %c0_27 = arith.constant 0 : index
    %50 = vector.load %arg8[%c0_26, %c0_27] : memref<2x128xi32, #tpu.memory_space<vmem>>, vector<2x128xi32>
    tpu.vector_store %arg8[%c0_26, %c0_27], %49 {strides = array<i32>} : memref<2x128xi32, #tpu.memory_space<vmem>>, vector<2x128xi32>,
    return
  }
}

</mosaic_0001>

<bundles_post_ra>
// kernel: tpu_custom_call.1
= control target key start
LH: loop header
LB: loop body
LE: loop exit
PB: predicated region body
PF: predicated region fallthrough
CT: control target
= control target key end

     0   :  { %14 = vsyncpa [#allocation3], 0  ;;  %s1026_s0 = inlined_call_operand.hbm [shape: f32[16,128], index: 0, kind: input, shape index: {}]   ;;  %s1027_s1 = inlined_call_operand.hbm [shape: bf16[128,128], index: 1, kind: input, shape index: {}]   ;;  %s1028_s2 = inlined_call_operand.vmem [shape: f32[1,128], index: 2, kind: input, shape index: {}]   ;;  %s1029_s3 = inlined_call_operand.hbm [shape: bf16[128,128], index: 3, kind: input, shape index: {}]   ;;  %s1030_s4 = inlined_call_operand.vmem [shape: f32[1,128], index: 4, kind: input, shape index: {}]   ;;  %s1031_s5 = inlined_call_operand.hbm [shape: f32[128,128], index: 5, kind: input, shape index: {}]   ;;  %s1032_s6 = inlined_call_operand.hbm [shape: f32[2,128], index: 6, kind: output, shape index: {0}]   ;;  %s1033_s7 = inlined_call_operand.hbm [shape: f32[2,128], index: 7, kind: output, shape index: {1}]   ;;  %s1034_s8 = inlined_call_operand.hbm [shape: s32[2,128], index: 8, kind: output, shape index: {2}]  }
   0x1   :  { %15 = vsyncpa [#allocation6], 0 }
   0x2   :  { %16 = vsyncpa [#allocation9], 0 }
   0x3   :  { %17 = vsyncpa [#allocation4], 0 }
   0x4   :  { %18 = vsyncpa [#allocation12], 0  ;;  %s852_s27 = smov [#allocation5]   ;;  %s688_s9 = scalar_lea.hbm %s1027_s1, 1024 }
   0x5   :  { %s36_s28 = sshll.u32 %s852_s27, 4  ;;  %p689_p0 = scmp.ne.s32.totalorder %s1027_s1, %s688_s9  ;;  %s37_s28 = int_to_ptr.vmem [resolvable:$true] %s36_s28 }
   0x6   :  { %p692_p1 = scmp.lt.u32.totalorder %s688_s9, %s1027_s1 }
   0x8   :  { %p694_p2 = pnand %p692_p1, %p689_p0 }
   0xa   :  { %697 = shalt.err (!%p694_p2)
}
   0xb   :  { %s698_s14 = scalar_lea.vmem %s37_s28, 1024  ;;  %p703_p4 = scmp.lt.s32.totalorder %s37_s28, %s37_s28 }
   0xc   :  { %p699_p3 = scmp.ne.s32.totalorder %s37_s28, %s698_s14  ;;  %p704_p5 = scmp.lt.s32.totalorder %s698_s14, %s698_s14 }
   0xe   :  { %p705_p6 = por %p704_p5, %p703_p4 }
  0x10   :  { %p706_p7 = pnand %p705_p6, %p699_p3 }
  0x12   :  { %709 = shalt.err (!%p706_p7)
}
  0x13   :  { %s853_s15 = smov 64   ;;  %s854_s16 = smov 4  }
  0x14   :  { %42 = dma.hbm_to_vmem [thread:$0]  %s1027_s1, 1024, %s37_s28, [#allocation6], %s853_s15, %s853_s15, %s854_s16  }
  0x15   :  { %s855_s19 = smov [#allocation2]   ;;  %s710_s23 = scalar_lea.hbm %s1026_s0, 256 }
  0x16   :  { %s24_s20 = sshll.u32 %s855_s19, 4  ;;  %p711_p8 = scmp.ne.s32.totalorder %s1026_s0, %s710_s23  ;;  %s25_s20 = int_to_ptr.vmem [resolvable:$true] %s24_s20 }
  0x17   :  { %p714_p9 = scmp.lt.u32.totalorder %s710_s23, %s1026_s0 }
  0x19   :  { %p716_p10 = pnand %p714_p9, %p711_p8 }
  0x1b   :  { %719 = shalt.err (!%p716_p10)
}
  0x1c   :  { %s720_s29 = scalar_lea.vmem %s25_s20, 256  ;;  %p725_p12 = scmp.lt.s32.totalorder %s25_s20, %s25_s20 }
  0x1d   :  { %p721_p11 = scmp.ne.s32.totalorder %s25_s20, %s720_s29  ;;  %p726_p13 = scmp.lt.s32.totalorder %s720_s29, %s720_s29 }
  0x1f   :  { %p727_p0 = por %p726_p13, %p725_p12 }
  0x21   :  { %p728_p1 = pnand %p727_p0, %p721_p11 }
  0x23   :  { %731 = shalt.err (!%p728_p1)
}
  0x24   :  { %s856_s1 = smov 128   ;;  %s857_s28 = smov 8  }
  0x25   :  { %30 = dma.hbm_to_vmem [thread:$0]  %s1026_s0, 256, %s25_s20, [#allocation3], %s856_s1, %s856_s1, %s857_s28  }
  0x26   :  { %s858_s10 = smov [#allocation7]   ;;  %s859_s12 = smov [#allocation8]  }
  0x27   :  { %s50_s11 = sshll.u32 %s858_s10, 4  ;;  %s64_s13 = sshll.u32 %s859_s12, 4  ;;  %s51_s11 = int_to_ptr.vmem [resolvable:$true] %s50_s11  ;;  %s941_s13 = int_to_ptr.vmem [resolvable:$true] %s64_s13 }
  0x28   :  { %s732_s18 = scalar_lea.hbm %s1029_s3, 1024 }
  0x29   :  { %p733_p2 = scmp.ne.s32.totalorder %s1029_s3, %s732_s18  ;;  %p736_p3 = scmp.lt.u32.totalorder %s732_s18, %s1029_s3 }
  0x2b   :  { %p738_p4 = pnand %p736_p3, %p733_p2 }
  0x2d   :  { %741 = shalt.err (!%p738_p4)
}
  0x2e   :  { %s742_s0 = scalar_lea.vmem %s51_s11, 1024  ;;  %p747_p6 = scmp.lt.s32.totalorder %s51_s11, %s51_s11 }
  0x2f   :  { %p743_p5 = scmp.ne.s32.totalorder %s51_s11, %s742_s0  ;;  %p748_p7 = scmp.lt.s32.totalorder %s742_s0, %s742_s0 }
  0x31   :  { %p749_p8 = por %p748_p7, %p747_p6 }
  0x33   :  { %p750_p9 = pnand %p749_p8, %p743_p5 }
  0x35   :  { %753 = shalt.err (!%p750_p9)
}
  0x36   :  { %56 = dma.hbm_to_vmem [thread:$0]  %s1029_s3, 1024, %s51_s11, [#allocation6], %s853_s15, %s853_s15, %s854_s16  }
  0x37   :  { %s754_s27 = scalar_lea.hbm %s1031_s5, 2048 }
  0x38   :  { %p755_p10 = scmp.ne.s32.totalorder %s1031_s5, %s754_s27  ;;  %p758_p11 = scmp.lt.u32.totalorder %s754_s27, %s1031_s5 }
  0x3a   :  { %p760_p12 = pnand %p758_p11, %p755_p10 }
  0x3c   :  { %763 = shalt.err (!%p760_p12)
}
  0x3d   :  { %s764_s12 = scalar_lea.vmem %s941_s13, 2048  ;;  %p769_p0 = scmp.lt.s32.totalorder %s941_s13, %s941_s13 }
  0x3e   :  { %p765_p13 = scmp.ne.s32.totalorder %s941_s13, %s764_s12  ;;  %p770_p1 = scmp.lt.s32.totalorder %s764_s12, %s764_s12 }
  0x40   :  { %p771_p2 = por %p770_p1, %p769_p0 }
  0x42   :  { %p772_p3 = pnand %p771_p2, %p765_p13 }
  0x44   :  { %775 = shalt.err (!%p772_p3)
}
  0x45   :  { %70 = dma.hbm_to_vmem [thread:$0]  %s1031_s5, 2048, %s941_s13, [#allocation9], %s856_s1, %s856_s1, %s857_s28  }
  0x46   :  { %842 = dma.done.wait [#allocation3], 256  }
  0x47   :  { %843 = vsyncadd [#allocation3], 4294967040 }
  0x48   :  { %844 = dma.done.wait [#allocation6], 2048  }
  0x49   :  { %845 = vsyncadd [#allocation6], 4294965248 }
  0x4a   :  { %846 = dma.done.wait [#allocation9], 2048  }
  0x4b   :  { %847 = vsyncadd [#allocation9], 4294965248  ;;  %v860_v0 = vmov 0.0   ;;  %vm861_vm0 = vmmov 0   ;;  %v670_v1 = vld [vmem:[#allocation5] sm:$0xff]   ;;  %v671_v2 = vld [vmem:[#allocation5 + $0x8] sm:$0xff]  }
  0x4c   :  { %557 = vmatprep.subr.bf16.mxu1 %v860_v0  ;;  %573 = vmatprep.mubr.msk.bf16.mxu1 %vm861_vm0, %v860_v0  ;;  %v672_v3 = vld [vmem:[#allocation5 + $0x10] sm:$0xff]   ;;  %v673_v4 = vld [vmem:[#allocation5 + $0x18] sm:$0xff]   ;;  %v674_v5 = vld [vmem:[#allocation5 + $0x20] sm:$0xff]   ;;  %vm245_vm1 = vcmask 1041409   ;;  %v862_v51 = vmov 0.0|0.0   ;;  %vm339_vm2 = vcmask 1041408  }
  0x4d   :  { %629 = vmatprep.mubr.msk.f32.mxu0 %vm861_vm0, %v860_v0  ;;  %558 = vmatpush3.bf16.msra.mxu1 %v670_v1  ;;  %v675_v6 = vld [vmem:[#allocation5 + $0x28] sm:$0xff]   ;;  %v676_v7 = vld [vmem:[#allocation5 + $0x30] sm:$0xff]   ;;  %v677_v8 = vld [vmem:[#allocation5 + $0x38] sm:$0xff]   ;;  %s864_s11 = smov [#allocation10]  }
  0x4e   :  { %559 = vmatprep.subr.bf16.mxu1 %v860_v0  ;;  %v84_v9 = vld [vmem:[#allocation2] sm:$0xff]  ;;  %v85_v10 = vld [vmem:[#allocation2 + $0x8] sm:$0xff]  ;;  %v678_v12 = vld [vmem:[#allocation7] sm:$0xff]   ;;  %632 = vmatprep.subr.bf16.mxu0 %v862_v51  ;;  %s466_s13 = sshll.u32 %s864_s11, 4  ;;  %s467_s13 = int_to_ptr.vmem [resolvable:$true] %s466_s13 }
  0x4f   :  { %v86_v11 = vpack.c.bf16 %v85_v10, %v84_v9  ;;  %v679_v13 = vld [vmem:[#allocation7 + $0x8] sm:$0xff]   ;;  %v680_v14 = vld [vmem:[#allocation7 + $0x10] sm:$0xff]   ;;  %v681_v15 = vld [vmem:[#allocation7 + $0x18] sm:$0xff]  }
  0x50   :  { %v682_v16 = vld [vmem:[#allocation7 + $0x20] sm:$0xff]   ;;  %v683_v17 = vld [vmem:[#allocation7 + $0x28] sm:$0xff]   ;;  %v684_v18 = vld [vmem:[#allocation7 + $0x30] sm:$0xff]  }
  0x51   :  { %560 = vmatpush3.bf16.msra.mxu1 %v671_v2  ;;  %v685_v19 = vld [vmem:[#allocation7 + $0x38] sm:$0xff]   ;;  %v504_v20 = vld [vmem:[%s1028_s2] ss:$0 sm:$0xff]  ;;  %v346_v49 = vld [vmem:[#allocation8] sm:$0xff] }
  0x52   :  { %561 = vmatprep.subr.bf16.mxu1 %v860_v0  ;;  %v347_v50 = vld [vmem:[#allocation8 + $0x8] sm:$0xff]  ;;  %v348_v53 = vld [vmem:[#allocation8 + $0x10] sm:$0xff]  ;;  %v349_v54 = vld [vmem:[#allocation8 + $0x18] sm:$0xff] }
  0x53   :  { %v633_v52 = vpack.c.bf16 %v347_v50, %v346_v49  ;;  %v636_v55 = vpack.c.bf16 %v349_v54, %v348_v53  ;;  %v350_v56 = vld [vmem:[#allocation8 + $0x20] sm:$0xff]  ;;  %v351_v57 = vld [vmem:[#allocation8 + $0x28] sm:$0xff]  ;;  %v352_v59 = vld [vmem:[#allocation8 + $0x30] sm:$0xff] }
  0x54   :  { %v639_v58 = vpack.c.bf16 %v351_v57, %v350_v56  ;;  %v353_v60 = vld [vmem:[#allocation8 + $0x38] sm:$0xff]  ;;  %v354_v62 = vld [vmem:[#allocation8 + $0x40] sm:$0xff]  ;;  %v355_v63 = vld [vmem:[#allocation8 + $0x48] sm:$0xff] }
  0x55   :  { %562 = vmatpush3.bf16.msra.mxu1 %v672_v3  ;;  %634 = vmatpush3.bf16.xpose.msra.mxu0 %v633_v52  ;;  %v642_v61 = vpack.c.bf16 %v353_v60, %v352_v59  ;;  %v356_v1 = vld [vmem:[#allocation8 + $0x50] sm:$0xff]  ;;  %v357_v2 = vld [vmem:[#allocation8 + $0x58] sm:$0xff] }
  0x56   :  { %563 = vmatprep.subr.bf16.mxu1 %v860_v0  ;;  %635 = vmatprep.subr.bf16.mxu0 %v862_v51  ;;  %v648_v3 = vpack.c.bf16 %v357_v2, %v356_v1 }
  0x59   :  { %564 = vmatpush3.bf16.msra.mxu1 %v673_v4  ;;  %v513_v4 = vld [vmem:[%s1030_s4] ss:$0 sm:$0xff]  ;;  %s863_s4 = smov [#allocation11]  }
  0x5a   :  { %565 = vmatprep.subr.bf16.mxu1 %v860_v0  ;;  %s476_s28 = sshll.u32 %s863_s4, 4  ;;  %s477_s28 = int_to_ptr.vmem [resolvable:$true] %s476_s28 }
  0x5b   :  { %s776_s14 = scalar_lea.vmem %s477_s28, 32  ;;  %p781_p5 = scmp.lt.s32.totalorder %s477_s28, %s477_s28 }
  0x5c   :  { %p777_p4 = scmp.ne.s32.totalorder %s477_s28, %s776_s14  ;;  %p782_p6 = scmp.lt.s32.totalorder %s776_s14, %s776_s14 }
  0x5d   :  { %566 = vmatpush3.bf16.msra.mxu1 %v674_v5  ;;  %637 = vmatpush3.bf16.xpose.msra.mxu0 %v636_v55 }
  0x5e   :  { %567 = vmatprep.subr.bf16.mxu1 %v860_v0  ;;  %638 = vmatprep.subr.bf16.mxu0 %v862_v51  ;;  %p783_p7 = por %p782_p6, %p781_p5 }
  0x60   :  { %p784_p8 = pnand %p783_p7, %p777_p4 }
  0x61   :  { %568 = vmatpush3.bf16.msra.mxu1 %v675_v6 }
  0x62   :  { %569 = vmatprep.subr.bf16.mxu1 %v860_v0 }
  0x65   :  { %570 = vmatpush3.bf16.msra.mxu1 %v676_v7  ;;  %640 = vmatpush3.bf16.xpose.msra.mxu0 %v639_v58 }
  0x66   :  { %571 = vmatprep.subr.bf16.mxu1 %v860_v0  ;;  %641 = vmatprep.subr.bf16.mxu0 %v862_v51 }
  0x69   :  { %572 = vmatpush3.bf16.msra.mxu1 %v677_v8 }
  0x6a   :  { %577 = vmatprep.subr.bf16.mxu1 %v860_v0 }
  0x6c   :  { %574 = vmatmul.mubr.bf16.vlgmr.msra.gmra.mrb[0].mxu1 %v86_v11 }
  0x6d   :  { %578 = vmatpush3.bf16.msra.mxu1 %v678_v12  ;;  %593 = vmatprep.mubr.msk.bf16.mxu1 %vm861_vm0, %v860_v0  ;;  %v358_v12 = vld [vmem:[#allocation8 + $0x60] sm:$0xff] }
  0x6e   :  { %579 = vmatprep.subr.bf16.mxu1 %v860_v0  ;;  %643 = vmatpush3.bf16.xpose.msra.mxu0 %v642_v61 }
  0x6f   :  { %644 = vmatprep.subr.bf16.mxu0 %v862_v51 }
  0x71   :  { %580 = vmatpush3.bf16.msra.mxu1 %v679_v13  ;;  %v359_v13 = vld [vmem:[#allocation8 + $0x68] sm:$0xff] }
  0x72   :  { %581 = vmatprep.subr.bf16.mxu1 %v860_v0 }
  0x75   :  { %582 = vmatpush3.bf16.msra.mxu1 %v680_v14  ;;  %v651_v14 = vpack.c.bf16 %v359_v13, %v358_v12 }
  0x76   :  { %583 = vmatprep.subr.bf16.mxu1 %v860_v0 }
  0x79   :  { %584 = vmatpush3.bf16.msra.mxu1 %v681_v15  ;;  %v360_v15 = vld [vmem:[#allocation8 + $0x70] sm:$0xff] }
  0x7a   :  { %585 = vmatprep.subr.bf16.mxu1 %v860_v0 }
  0x7d   :  { %586 = vmatpush3.bf16.msra.mxu1 %v682_v16  ;;  %v361_v16 = vld [vmem:[#allocation8 + $0x78] sm:$0xff] }
  0x7e   :  { %587 = vmatprep.subr.bf16.mxu1 %v860_v0 }
  0x81   :  { %588 = vmatpush3.bf16.msra.mxu1 %v683_v17  ;;  %v654_v17 = vpack.c.bf16 %v361_v16, %v360_v15 }
  0x82   :  { %589 = vmatprep.subr.bf16.mxu1 %v860_v0 }
  0x85   :  { %590 = vmatpush3.bf16.msra.mxu1 %v684_v18 }
  0x86   :  { %591 = vmatprep.subr.bf16.mxu1 %v860_v0  ;;  %v645_v0 = vpack.c.bf16 %v355_v63, %v354_v62 }
  0x88   :  { %646 = vmatpush3.bf16.xpose.msra.mxu0 %v645_v0 }
  0x89   :  { %592 = vmatpush3.bf16.msra.mxu1 %v685_v19  ;;  %647 = vmatprep.subr.bf16.mxu0 %v862_v51 }
  0x90   :  { %649 = vmatpush3.bf16.xpose.msra.mxu0 %v648_v3 }
  0x91   :  { %650 = vmatprep.subr.bf16.mxu0 %v862_v51 }
  0x98   :  { %652 = vmatpush3.bf16.xpose.msra.mxu0 %v651_v14 }
  0x99   :  { %653 = vmatprep.subr.bf16.mxu0 %v862_v51 }
  0xa0   :  { %655 = vmatpush3.bf16.xpose.msra.mxu0 %v654_v17 }
 0x13f   :  { %v192_v21 = vpop.f32.mrb[0].mxu1 }
 0x140   :  { %v193_v22 = vadd.f32 %v504_v20, %v192_v21  ;;  %v575_v23 = vpop.f32.mrb[1].mxu1 }
 0x141   :  { %v195_v24 = vpop.f32.mrb[2].mxu1 }
 0x142   :  { %v199_v25 = vmax.f32 %v193_v22, 0.0  ;;  %v196_v26 = vadd.f32 %v504_v20, %v195_v24  ;;  %v576_v27 = vpop.f32.mrb[3].mxu1  ;;  %v433_v22 = vlaneseq }
 0x144   :  { %v201_v28 = vrot.slane %v199_v25, 4  ;;  %v200_v29 = vmax.f32 %v196_v26, 0.0  ;;  %v434_v23 = vand.u32 127, %v433_v22 }
 0x146   :  { %v202_v30 = vadd.f32 %v201_v28, %v199_v25  ;;  %v207_v31 = vrot.slane %v200_v29, 4  ;;  %vm435_vm3 = vcmp.lt.s32.totalorder %v434_v23, 8 }
 0x148   :  { %v203_v32 = vrot.slane %v202_v30, 2  ;;  %v208_v33 = vadd.f32 %v207_v31, %v200_v29 }
 0x14a   :  { %v204_v34 = vadd.f32 %v203_v32, %v202_v30  ;;  %v209_v35 = vrot.slane %v208_v33, 2 }
 0x14c   :  { %v205_v36 = vrot.slane %v204_v34, 1  ;;  %v210_v37 = vadd.f32 %v209_v35, %v208_v33 }
 0x14e   :  { %v206_v38 = vadd.f32 %v205_v36, %v204_v34  ;;  %v211_v39 = vrot.slane %v210_v37, 1 }
 0x150   :  { %v214_v40 = vmul.f32 0.125, %v206_v38  ;;  %v212_v41 = vadd.f32 %v211_v39, %v210_v37 }
 0x152   :  { %v216_v42 = vpack.c.bf16 %v214_v40, %v214_v40  ;;  %v215_v43 = vmul.f32 0.125, %v212_v41 }
 0x154   :  { %v217_v44 = vpack.c.bf16 %v215_v43, %v215_v43  ;;  %v243_v45 = vunpack.c.l.b16 %v216_v42 }
 0x156   :  { %v244_v46 = vunpack.c.l.b16 %v217_v44 }
 0x158   :  { %v246_v47 = vsel %vm245_vm1, %v244_v46, %v243_v45 }
 0x159   :  { %v247_v48 = vpack.c.b16 %v246_v47, %v246_v47 }
 0x15b   :  { %594 = vmatmul.mubr.bf16.vlgmr.msra.gmra.mrb[4].mxu1 %v247_v48 }
 0x22e   :  { %v331_v5 = vpop.f32.mrb[4].mxu1 }
 0x22f   :  { %v332_v6 = vadd.f32 %v513_v4, %v331_v5  ;;  %v595_v7 = vpop.f32.mrb[5].mxu1 }
 0x230   :  { %v334_v8 = vpop.f32.mrb[6].mxu1 }
 0x231   :  { %337 = vst [vmem:[#allocation10] sm:$0x3] %v332_v6  ;;  %v596_v9 = vpop.f32.mrb[7].mxu1  ;;  %v338_v10 = vmul.f32 %v332_v6, %v332_v6 }
 0x233   :  { %v340_v11 = vsel %vm339_vm2, %v338_v10, 0.0 }
 0x234   :  { %341 = vadd.xlane.f32.xlu0 %v340_v11 }
 0x2c1   :  { %v342_v18 = vpop.xlane.xlu0 %341 }
 0x2c2   :  { %v343_v19 = vadd.f32 1e-12, %v342_v18 }
 0x2c4   :  { %686 = vrsqrt.f32 %v343_v19 }
 0x2ce   :  { %v687_v20 = vpop.eup %686 }
 0x2cf   :  { %v345_v21 = vmul.f32 %v687_v20, %v332_v6 }
 0x2d1   :  { %630 = vmatmul.mubr.f32.vlgmr.msra.gmra.mrb[0].mxu0 %v345_v21 }
 0x3a4   :  { %v428_v24 = vpop.f32.mrb[0].mxu0 }
 0x3a5   :  { %432 = vst [vmem:[#allocation11] sm:$0x3] %v428_v24  ;;  %v631_v25 = vpop.f32.mrb[1].mxu0  ;;  %v436_v26 = vsel %vm435_vm3, %v428_v24, -inf }
 0x3a6   :  { %v437_v27 = vsel %vm339_vm2, %v436_v26, -inf }
 0x3a7   :  { %438 = vmax.xlane.f32.xlu0 %v437_v27 }
 0x434   :  { %v439_v28 = vpop.xlane.xlu0 %438 }
 0x435   :  { %vm440_vm4 = vcmp.eq.f32.partialorder %v436_v26, %v439_v28 }
 0x436   :  { %v441_v29 = vsel %vm440_vm4, %v434_v23, 128 }
 0x437   :  { %v442_v30 = vsel %vm339_vm2, %v441_v29, 2147483647 }
 0x438   :  { %v444_v31 = vshra.s32 %v442_v30, 16  ;;  %v443_v33 = vand.u32 65535, %v442_v30 }
 0x43a   :  { %v446_v32 = vcvt.s32.f32 %v444_v31  ;;  %v445_v35 = vcvt.s32.f32 %v443_v33 }
 0x43c   :  { %447 = vmin.xlane.f32.xlu1 %v446_v32 }
 0x4c9   :  { %v448_v34 = vpop.xlane.xlu1 %447 }
 0x4ca   :  { %vm449_vm5 = vcmp.eq.f32.partialorder %v446_v32, %v448_v34 }
 0x4cb   :  { %v450_v36 = vsel %vm449_vm5, %v445_v35, inf }
 0x4cc   :  { %451 = vmin.xlane.f32.xlu1 %v450_v36 }
 0x4cd   :  { %787 = shalt.err (!%p784_p8)
}
 0x4ce   :  { %s788_s19 = scalar_lea.hbm %s1033_s7, 32 }
 0x4cf   :  { %p789_p9 = scmp.ne.s32.totalorder %s1033_s7, %s788_s19  ;;  %p792_p10 = scmp.lt.u32.totalorder %s788_s19, %s1033_s7 }
 0x4d1   :  { %p794_p11 = pnand %p792_p10, %p789_p9 }
 0x4d3   :  { %797 = shalt.err (!%p794_p11)
}
 0x4d4   :  { %479 = dma.vmem_to_hbm [thread:$0]  %s477_s28, 32, %s1033_s7, [#allocation12]  }
 0x4d5   :  { %s798_s25 = scalar_lea.vmem %s467_s13, 32  ;;  %p803_p13 = scmp.lt.s32.totalorder %s467_s13, %s467_s13 }
 0x4d6   :  { %p799_p12 = scmp.ne.s32.totalorder %s467_s13, %s798_s25  ;;  %p804_p0 = scmp.lt.s32.totalorder %s798_s25, %s798_s25 }
 0x4d8   :  { %p805_p1 = por %p804_p0, %p803_p13 }
 0x4da   :  { %p806_p2 = pnand %p805_p1, %p799_p12 }
 0x4dc   :  { %809 = shalt.err (!%p806_p2)
}
 0x4dd   :  { %s810_s29 = scalar_lea.hbm %s1032_s6, 32 }
 0x4de   :  { %p811_p3 = scmp.ne.s32.totalorder %s1032_s6, %s810_s29  ;;  %p814_p4 = scmp.lt.u32.totalorder %s810_s29, %s1032_s6 }
 0x4e0   :  { %p816_p5 = pnand %p814_p4, %p811_p3 }
 0x4e2   :  { %819 = shalt.err (!%p816_p5)
}
 0x4e3   :  { %469 = dma.vmem_to_hbm [thread:$0]  %s467_s13, 32, %s1032_s6, [#allocation4]   ;;  %v454_v37 = vcvt.f32.s32 %v448_v34  ;;  %vm457_vm6 = vcmp.gt.f32.partialorder %v439_v28, 0.0 }
 0x4e4   :  { %s865_s15 = smov [#allocation13]  }
 0x4e5   :  { %v455_v39 = vshll.u32 %v454_v37, 16  ;;  %s486_s5 = sshll.u32 %s865_s15, 4  ;;  %s487_s5 = int_to_ptr.vmem [resolvable:$true] %s486_s5 }
 0x4e6   :  { %s820_s16 = scalar_lea.vmem %s487_s5, 32  ;;  %p825_p7 = scmp.lt.s32.totalorder %s487_s5, %s487_s5 }
 0x4e7   :  { %p821_p6 = scmp.ne.s32.totalorder %s487_s5, %s820_s16  ;;  %p826_p8 = scmp.lt.s32.totalorder %s820_s16, %s820_s16 }
 0x4e9   :  { %p827_p9 = por %p826_p8, %p825_p7 }
 0x4eb   :  { %p828_p10 = pnand %p827_p9, %p821_p6 }
 0x559   :  { %v452_v38 = vpop.xlane.xlu1 %451 }
 0x55a   :  { %v453_v40 = vcvt.f32.s32 %v452_v38 }
 0x55c   :  { %v456_v41 = vadd.s32 %v455_v39, %v453_v40 }
 0x55e   :  { %v458_v42 = vsel %vm457_vm6, %v456_v41, 4294967295 }
 0x55f   :  { %459 = vst [vmem:[#allocation13] sm:$0x3] %v458_v42 }
 0x560   :  { %831 = shalt.err (!%p828_p10)
}
 0x561   :  { %s832_s1 = scalar_lea.hbm %s1034_s8, 32 }
 0x562   :  { %p833_p11 = scmp.ne.s32.totalorder %s1034_s8, %s832_s1  ;;  %p836_p12 = scmp.lt.u32.totalorder %s832_s1, %s1034_s8 }
 0x564   :  { %p838_p13 = pnand %p836_p12, %p833_p11 }
 0x566   :  { %841 = shalt.err (!%p838_p13)
}
 0x567   :  { %489 = dma.vmem_to_hbm [thread:$0]  %s487_s5, 32, %s1034_s8, [#allocation12]  }
 0x568   :  { %848 = dma.done.wait [#allocation4], 32  }
 0x569   :  { %849 = vsyncadd [#allocation4], 4294967264 }
 0x56a   :  { %850 = dma.done.wait [#allocation12], 64  }
 0x56b   :  { %851 = vsyncadd [#allocation12], 4294967232 }
 0x56c   :  { %499 = vsyncpa [#allocation3], 1 }
 0x56d   :  { %500 = vsyncpa [#allocation6], 1 }
 0x56e   :  { %501 = vsyncpa [#allocation9], 1 }
 0x56f   :  { %502 = vsyncpa [#allocation4], 1 }
 0x570   :  { %503 = vsyncpa [#allocation12], 1 }

</bundles_post_ra>
